<compile_context>
chip_gen: v6e
topology: v6e:2x2x1
jax: 0.10.0
libtpu: 0.0.40
codegen_flags: <defaults>
</compile_context>

<pallas_src>
import jax
import jax.numpy as jnp
from jax.experimental import pallas as pl
from jax.experimental.pallas import tpu as pltpu


def switching_kernel(x_ref, dec_ref, w_ref, vecs_ref, out_ref):
    """Whole forward pass in one kernel invocation (no grid).

    x_ref    : (seq*B, dim) bf16  time-major context, row t*B+b = (t, b)  [VMEM]
    dec_ref  : (B, dim)     f32   last decoder RNN outputs                [VMEM]
    w_ref    : (2*dim, dim) bf16  [W_ih^T ; W_hh^T]                       [VMEM]
    vecs_ref : (4, dim)     f32   [b_ih+b_hh ; wf0*w1 ; wf1*w2 ; bias row][VMEM]
    out_ref  : (B, 1)       f32   sigmoid probabilities                   [VMEM]
    """
    seq_b, dim = x_ref.shape
    B = dec_ref.shape[0]
    seq = seq_b // B

    wih = w_ref[0:dim, :]            # (dim, dim) bf16
    whh = w_ref[dim:2 * dim, :]      # (dim, dim) bf16

    b_rnn = vecs_ref[0:1, :]         # (1, dim) f32
    w1p = vecs_ref[1:2, :]           # (1, dim) f32   wf0 * linear_out_1.weight
    w2p = vecs_ref[2:3, :]           # (1, dim) f32   wf1 * linear_out_2.weight
    bias = vecs_ref[3:4, 0:1]        # (1, 1)   f32   wf0*b1 + wf1*b2 + bf

    # Hoisted input projection for all (timestep, batch) rows at once:
    # one bf16 MXU matmul with f32 accumulation, RNN bias folded in here.
    pre_all = (jnp.dot(x_ref[...], wih,
                       preferred_element_type=jnp.float32)
               + b_rnn)                                       # (seq*B, dim) f32

    # Fully-unrolled recurrence; h stays in vregs (no VMEM round-trip).
    # Only the MXU operand is bf16; tanh and the carried state stay f32.
    h = jnp.zeros((B, dim), jnp.float32)
    for t in range(seq):
        hh = jnp.dot(h.astype(jnp.bfloat16), whh,
                     preferred_element_type=jnp.float32)      # (B, dim) f32
        h = jnp.tanh(pre_all[t * B:(t + 1) * B, :] + hh)

    # Folded output head on the VPU: elementwise multiply + lane reduce
    # (no tiny (1,dim)@(dim,1) MXU matmuls), all in f32.
    s = jnp.sum(h * w1p + dec_ref[...] * w2p,
                axis=-1, keepdims=True)                       # (B, 1)
    out_ref[...] = jax.nn.sigmoid(s + bias)


def prepare_params(params):
    """One-time param prep: transpose + bf16-cast RNN weights into one slab,
    fold the output head and all biases into one small f32 slab."""
    dim = params["w_ih"].shape[0]
    wf0 = params["wf"][0, 0]
    wf1 = params["wf"][0, 1]
    fused_bias = (wf0 * params["b1"][0] + wf1 * params["b2"][0]
                  + params["bf"][0]).astype(jnp.float32)

    rnn_w = jnp.concatenate(
        [params["w_ih"].T, params["w_hh"].T], axis=0
    ).astype(jnp.bfloat16)                                     # (2*dim, dim)

    vecs = jnp.stack(
        [
            (params["b_ih"] + params["b_hh"]).astype(jnp.float32),  # b_rnn
            (wf0 * params["w1"][0]).astype(jnp.float32),            # folded w1
            (wf1 * params["w2"][0]).astype(jnp.float32),            # folded w2
            jnp.full((dim,), fused_bias, jnp.float32),              # fused bias
        ],
        axis=0,
    )                                                          # (4, dim)

    return {"rnn_w": rnn_w, "vecs": vecs}


def switching_network_forward(context_vector, decoder_out, prepared):
    """context_vector: (B, seq, dim); decoder_out: (B, 1, dim) -> (B, 1) prob.

    B = 1 reproduces the PyTorch module exactly; B > 1 batches independent
    (context, decoder) pairs through the same kernel to amortize fixed cost.
    """
    B, seq, dim = context_vector.shape

    # Time-major layout so each recurrence step reads a contiguous sublane
    # block pre_all[t*B:(t+1)*B]. For B == 1 this is just a reshape.
    x_tm = jnp.transpose(context_vector, (1, 0, 2)).reshape(seq * B, dim)
    x_tm = x_tm.astype(jnp.bfloat16)
    dec = decoder_out[:, 0, :].astype(jnp.float32)             # (B, dim)

    vmem = pl.BlockSpec(memory_space=pltpu.MemorySpace.VMEM)

    return pl.pallas_call(
        switching_kernel,
        out_shape=jax.ShapeDtypeStruct((B, 1), jnp.float32),
        in_specs=[vmem, vmem, vmem, vmem],
        out_specs=vmem,
    )(x_tm, dec, prepared["rnn_w"], prepared["vecs"])


def init_params(key, dim):
    """Deterministic init matching PyTorch shapes (uniform +-1/sqrt(dim))."""
    ks = jax.random.split(key, 10)
    bound = 1.0 / jnp.sqrt(dim)
    u = lambda k, shape: jax.random.uniform(k, shape, jnp.float32, -bound, bound)
    return {
        "w_ih": u(ks[0], (dim, dim)),   # RNN weight_ih_l0
        "w_hh": u(ks[1], (dim, dim)),   # RNN weight_hh_l0
        "b_ih": u(ks[2], (dim,)),
        "b_hh": u(ks[3], (dim,)),
        "w1":   u(ks[4], (1, dim)),     # linear_out_1
        "b1":   u(ks[5], (1,)),
        "w2":   u(ks[6], (1, dim)),     # linear_out_2
        "b2":   u(ks[7], (1,)),
        "wf":   u(ks[8], (1, 2)),       # final_layer
        "bf":   u(ks[9], (1,)),
    }


def reference_forward(context_vector, decoder_out, params):
    """Pure-JAX f32 reference of the PyTorch forward (batched), for validation."""
    B, seq, dim = context_vector.shape
    h = jnp.zeros((B, dim), jnp.float32)
    for t in range(seq):
        h = jnp.tanh(context_vector[:, t, :] @ params["w_ih"].T + params["b_ih"]
                     + h @ params["w_hh"].T + params["b_hh"])
    o1 = h @ params["w1"].T + params["b1"]
    o2 = decoder_out[:, 0, :] @ params["w2"].T + params["b2"]
    final = jnp.concatenate([o1, o2], axis=1) @ params["wf"].T + params["bf"]
    return jax.nn.sigmoid(final)


# TODO(synk): training path (BCELoss + SGD + L1/L2 reg) and save/load are host-side
# PyTorch utilities with no kernel equivalent; only the forward pass is implemented.

if __name__ == "__main__":
    dim, seq = 32, 8
    key = jax.random.PRNGKey(0)
    k_ctx, k_dec, k_par = jax.random.split(key, 3)

    params = init_params(k_par, dim)
    prepared = prepare_params(params)           # one-time, off the hot path
    fwd = jax.jit(switching_network_forward)

    # --- B = 1: exactly the original module's forward --------------------
    context_vector = jax.random.normal(k_ctx, (1, seq, dim), jnp.float32)
    decoder_out = jax.random.normal(k_dec, (1, 1, dim), jnp.float32)

    out = jax.block_until_ready(fwd(context_vector, decoder_out, prepared))
    ref = reference_forward(context_vector, decoder_out, params)
    assert out.shape == (1, 1)
    # bf16 MXU operands -> tolerance loosened from 1e-5 to 1e-2.
    assert jnp.allclose(out, ref, atol=1e-2, rtol=1e-2), (out, ref)

    # --- B = 4: batched variant (amortizes fixed kernel overhead) --------
    B = 4
    ctx_b = jax.random.normal(jax.random.PRNGKey(1), (B, seq, dim), jnp.float32)
    dec_b = jax.random.normal(jax.random.PRNGKey(2), (B, 1, dim), jnp.float32)

    out_b = jax.block_until_ready(fwd(ctx_b, dec_b, prepared))
    ref_b = reference_forward(ctx_b, dec_b, params)
    assert out_b.shape == (B, 1)
    assert jnp.allclose(out_b, ref_b, atol=1e-2, rtol=1e-2), (out_b, ref_b)

    print("KERNEL_OK")
</pallas_src>

<mosaic_0001>
module attributes {stable_mosaic.version = 11 : i64} {
  func.func @switching_kernel(%arg0: memref<8x32xbf16, #tpu.memory_space<vmem>>, %arg1: memref<1x32xf32, #tpu.memory_space<vmem>>, %arg2: memref<64x32xbf16, #tpu.memory_space<vmem>>, %arg3: memref<4x32xf32, #tpu.memory_space<vmem>>, %arg4: memref<1x1xf32, #tpu.memory_space<vmem>>) attributes {dimension_semantics = [], scalar_prefetch = 0 : i64, scratch_operands = 0 : i64, tpu.core_type = #tpu.core_type<tc>} {
    %c0 = arith.constant 0 : index
    %c0_0 = arith.constant 0 : index
    %0 = vector.load %arg2[%c0, %c0_0] : memref<64x32xbf16, #tpu.memory_space<vmem>>, vector<32x32xbf16>
    %c32 = arith.constant 32 : index
    %c0_1 = arith.constant 0 : index
    %1 = vector.load %arg2[%c32, %c0_1] : memref<64x32xbf16, #tpu.memory_space<vmem>>, vector<32x32xbf16>
    %c0_2 = arith.constant 0 : index
    %c0_3 = arith.constant 0 : index
    %2 = vector.load %arg3[%c0_2, %c0_3] : memref<4x32xf32, #tpu.memory_space<vmem>>, vector<1x32xf32>
    %c1 = arith.constant 1 : index
    %c0_4 = arith.constant 0 : index
    %3 = vector.load %arg3[%c1, %c0_4] : memref<4x32xf32, #tpu.memory_space<vmem>>, vector<1x32xf32>
    %c2 = arith.constant 2 : index
    %c0_5 = arith.constant 0 : index
    %4 = vector.load %arg3[%c2, %c0_5] : memref<4x32xf32, #tpu.memory_space<vmem>>, vector<1x32xf32>
    %c3 = arith.constant 3 : index
    %c0_6 = arith.constant 0 : index
    %5 = vector.load %arg3[%c3, %c0_6] : memref<4x32xf32, #tpu.memory_space<vmem>>, vector<1x1xf32>
    %c0_7 = arith.constant 0 : index
    %c0_8 = arith.constant 0 : index
    %6 = vector.load %arg0[%c0_7, %c0_8] : memref<8x32xbf16, #tpu.memory_space<vmem>>, vector<8x32xbf16>
    %cst = arith.constant dense<0.000000e+00> : vector<8x32xf32>
    %7 = tpu.matmul %6, %0, %cst {dimension_numbers = #tpu.dot_dimension_numbers<[1], [0], [0], [1], [0, 0, 1, 1], [], []>} : vector<8x32xbf16>, vector<32x32xbf16>, vector<8x32xf32> -> vector<8x32xf32>
    %8 = vector.broadcast %2 : vector<1x32xf32> to vector<8x32xf32>
    %9 = arith.addf %7, %8 : vector<8x32xf32>
    %cst_9 = arith.constant 0.000000e+00 : f32
    %10 = vector.broadcast %cst_9 : f32 to vector<1x32xf32>
    %11 = arith.truncf %10 : vector<1x32xf32> to vector<1x32xbf16>
    %cst_10 = arith.constant dense<0.000000e+00> : vector<1x32xf32>
    %12 = tpu.matmul %11, %1, %cst_10 {dimension_numbers = #tpu.dot_dimension_numbers<[1], [0], [0], [1], [0, 0, 1, 1], [], []>} : vector<1x32xbf16>, vector<32x32xbf16>, vector<1x32xf32> -> vector<1x32xf32>
    %13 = vector.extract_strided_slice %9 {offsets = [0, 0], sizes = [1, 32], strides = [1, 1]} : vector<8x32xf32> to vector<1x32xf32>
    %14 = arith.addf %13, %12 : vector<1x32xf32>
    %15 = math.tanh %14 : vector<1x32xf32>
    %16 = arith.truncf %15 : vector<1x32xf32> to vector<1x32xbf16>
    %cst_11 = arith.constant dense<0.000000e+00> : vector<1x32xf32>
    %17 = tpu.matmul %16, %1, %cst_11 {dimension_numbers = #tpu.dot_dimension_numbers<[1], [0], [0], [1], [0, 0, 1, 1], [], []>} : vector<1x32xbf16>, vector<32x32xbf16>, vector<1x32xf32> -> vector<1x32xf32>
    %18 = vector.extract_strided_slice %9 {offsets = [1, 0], sizes = [1, 32], strides = [1, 1]} : vector<8x32xf32> to vector<1x32xf32>
    %19 = arith.addf %18, %17 : vector<1x32xf32>
    %20 = math.tanh %19 : vector<1x32xf32>
    %21 = arith.truncf %20 : vector<1x32xf32> to vector<1x32xbf16>
    %cst_12 = arith.constant dense<0.000000e+00> : vector<1x32xf32>
    %22 = tpu.matmul %21, %1, %cst_12 {dimension_numbers = #tpu.dot_dimension_numbers<[1], [0], [0], [1], [0, 0, 1, 1], [], []>} : vector<1x32xbf16>, vector<32x32xbf16>, vector<1x32xf32> -> vector<1x32xf32>
    %23 = vector.extract_strided_slice %9 {offsets = [2, 0], sizes = [1, 32], strides = [1, 1]} : vector<8x32xf32> to vector<1x32xf32>
    %24 = arith.addf %23, %22 : vector<1x32xf32>
    %25 = math.tanh %24 : vector<1x32xf32>
    %26 = arith.truncf %25 : vector<1x32xf32> to vector<1x32xbf16>
    %cst_13 = arith.constant dense<0.000000e+00> : vector<1x32xf32>
    %27 = tpu.matmul %26, %1, %cst_13 {dimension_numbers = #tpu.dot_dimension_numbers<[1], [0], [0], [1], [0, 0, 1, 1], [], []>} : vector<1x32xbf16>, vector<32x32xbf16>, vector<1x32xf32> -> vector<1x32xf32>
    %28 = vector.extract_strided_slice %9 {offsets = [3, 0], sizes = [1, 32], strides = [1, 1]} : vector<8x32xf32> to vector<1x32xf32>
    %29 = arith.addf %28, %27 : vector<1x32xf32>
    %30 = math.tanh %29 : vector<1x32xf32>
    %31 = arith.truncf %30 : vector<1x32xf32> to vector<1x32xbf16>
    %cst_14 = arith.constant dense<0.000000e+00> : vector<1x32xf32>
    %32 = tpu.matmul %31, %1, %cst_14 {dimension_numbers = #tpu.dot_dimension_numbers<[1], [0], [0], [1], [0, 0, 1, 1], [], []>} : vector<1x32xbf16>, vector<32x32xbf16>, vector<1x32xf32> -> vector<1x32xf32>
    %33 = vector.extract_strided_slice %9 {offsets = [4, 0], sizes = [1, 32], strides = [1, 1]} : vector<8x32xf32> to vector<1x32xf32>
    %34 = arith.addf %33, %32 : vector<1x32xf32>
    %35 = math.tanh %34 : vector<1x32xf32>
    %36 = arith.truncf %35 : vector<1x32xf32> to vector<1x32xbf16>
    %cst_15 = arith.constant dense<0.000000e+00> : vector<1x32xf32>
    %37 = tpu.matmul %36, %1, %cst_15 {dimension_numbers = #tpu.dot_dimension_numbers<[1], [0], [0], [1], [0, 0, 1, 1], [], []>} : vector<1x32xbf16>, vector<32x32xbf16>, vector<1x32xf32> -> vector<1x32xf32>
    %38 = vector.extract_strided_slice %9 {offsets = [5, 0], sizes = [1, 32], strides = [1, 1]} : vector<8x32xf32> to vector<1x32xf32>
    %39 = arith.addf %38, %37 : vector<1x32xf32>
    %40 = math.tanh %39 : vector<1x32xf32>
    %41 = arith.truncf %40 : vector<1x32xf32> to vector<1x32xbf16>
    %cst_16 = arith.constant dense<0.000000e+00> : vector<1x32xf32>
    %42 = tpu.matmul %41, %1, %cst_16 {dimension_numbers = #tpu.dot_dimension_numbers<[1], [0], [0], [1], [0, 0, 1, 1], [], []>} : vector<1x32xbf16>, vector<32x32xbf16>, vector<1x32xf32> -> vector<1x32xf32>
    %43 = vector.extract_strided_slice %9 {offsets = [6, 0], sizes = [1, 32], strides = [1, 1]} : vector<8x32xf32> to vector<1x32xf32>
    %44 = arith.addf %43, %42 : vector<1x32xf32>
    %45 = math.tanh %44 : vector<1x32xf32>
    %46 = arith.truncf %45 : vector<1x32xf32> to vector<1x32xbf16>
    %cst_17 = arith.constant dense<0.000000e+00> : vector<1x32xf32>
    %47 = tpu.matmul %46, %1, %cst_17 {dimension_numbers = #tpu.dot_dimension_numbers<[1], [0], [0], [1], [0, 0, 1, 1], [], []>} : vector<1x32xbf16>, vector<32x32xbf16>, vector<1x32xf32> -> vector<1x32xf32>
    %48 = vector.extract_strided_slice %9 {offsets = [7, 0], sizes = [1, 32], strides = [1, 1]} : vector<8x32xf32> to vector<1x32xf32>
    %49 = arith.addf %48, %47 : vector<1x32xf32>
    %50 = math.tanh %49 : vector<1x32xf32>
    %51 = arith.mulf %50, %3 : vector<1x32xf32>
    %c0_18 = arith.constant 0 : index
    %c0_19 = arith.constant 0 : index
    %52 = vector.load %arg1[%c0_18, %c0_19] : memref<1x32xf32, #tpu.memory_space<vmem>>, vector<1x32xf32>
    %53 = arith.mulf %52, %4 : vector<1x32xf32>
    %54 = arith.addf %51, %53 : vector<1x32xf32>
    %cst_20 = arith.constant dense<0.000000e+00> : vector<1xf32>
    %55 = vector.multi_reduction <add>, %54, %cst_20 [1] : vector<1x32xf32> to vector<1xf32>
    %56 = vector.shape_cast %55 : vector<1xf32> to vector<1x1xf32>
    %57 = arith.addf %56, %5 : vector<1x1xf32>
    %58 = arith.negf %57 : vector<1x1xf32>
    %59 = math.exp %58 : vector<1x1xf32>
    %cst_21 = arith.constant 1.000000e+00 : f32
    %60 = vector.broadcast %cst_21 : f32 to vector<1x1xf32>
    %61 = arith.addf %60, %59 : vector<1x1xf32>
    %62 = arith.divf %60, %61 : vector<1x1xf32>
    %c0_22 = arith.constant 0 : index
    %c0_23 = arith.constant 0 : index
    %63 = vector.load %arg4[%c0_22, %c0_23] : memref<1x1xf32, #tpu.memory_space<vmem>>, vector<1x1xf32>
    tpu.vector_store %arg4[%c0_22, %c0_23], %62 {strides = array<i32>} : memref<1x1xf32, #tpu.memory_space<vmem>>, vector<1x1xf32>,
    return
  }
}

</mosaic_0001>

<bundles_post_ra>
// kernel: switching_network_forward.1
= control target key start
LH: loop header
LB: loop body
LE: loop exit
PB: predicated region body
PF: predicated region fallthrough
CT: control target
= control target key end

     0   :  { %v715_v1 = vmov 0.0   ;;  %vm716_vm0 = vmmov 0   ;;  %s851_s0 = inlined_call_operand.vmem [shape: bf16[8,32], index: 0, kind: input, shape index: {}]   ;;  %s852_s1 = inlined_call_operand.vmem [shape: f32[1,32], index: 1, kind: input, shape index: {}]   ;;  %s853_s2 = inlined_call_operand.vmem [shape: bf16[64,32], index: 2, kind: input, shape index: {}]   ;;  %s854_s3 = inlined_call_operand.vmem [shape: f32[4,32], index: 3, kind: input, shape index: {}]   ;;  %s855_s4 = inlined_call_operand.hbm [shape: f32[1,1], index: 4, kind: output, shape index: {}]  }
   0x1   :  { %v669_v0 = vld [vmem:[%s853_s2 + $0x8] sm:$0xff]   ;;  %593 = vmatprep.subr.bf16.mxu0 %v715_v1  ;;  %601 = vmatprep.subr.bf16.mxu1 %v715_v1  ;;  %v752_v2 = vld [vmem:[%s853_s2 + $0x18] sm:$0xff]   ;;  %v671_v3 = vld [vmem:[%s853_s2] sm:$0xff]  }
   0x2   :  { %594 = vmatpush3.bf16.msra.mxu0 %v669_v0  ;;  %597 = vmatprep.mubr.msk.bf16.mxu0 %vm716_vm0, %v715_v1  ;;  %v764_v4 = vld [vmem:[%s853_s2 + $0x10] sm:$0xff]  }
   0x3   :  { %602 = vmatpush3.bf16.msra.mxu1 %v752_v2  ;;  %595 = vmatprep.subr.bf16.mxu0 %v715_v1 }
   0x4   :  { %603 = vmatprep.subr.bf16.mxu1 %v715_v1  ;;  %605 = vmatprep.mubr.msk.bf16.mxu1 %vm716_vm0, %v715_v1 }
   0x5   :  { %9 = vsyncpa [#allocation3], 0  ;;  %v31_v5 = vld [vmem:[%s851_s0] sm:$0xf]  ;;  %vm48_vm1 = vcmask 261120   ;;  %v717_v6 = vmov 0  }
   0x6   :  { %596 = vmatpush3.bf16.msra.mxu0 %v671_v3  ;;  %v552_v7 = vld [vmem:[%s854_s3] ss:$0 sm:$0xff]  ;;  %vm522_vm2 = vcmask 261127   ;;  %vm536_vm3 = vcmask 7175  }
   0x7   :  { %604 = vmatpush3.bf16.msra.mxu1 %v764_v4  ;;  %609 = vmatprep.subr.bf16.mxu0 %v715_v1 }
   0x8   :  { %617 = vmatprep.subr.bf16.mxu1 %v715_v1 }
   0x9   :  { %598 = vmatmul.mubr.msk.bf16.vlgmr.msra.gmra.mxu0 %vm48_vm1, %v31_v5 }
   0xa   :  { %606 = vmatmul.mubr.bf16.vlgmr.msra.gmra.mxu1 %v717_v6  ;;  %610 = vmatpush3.bf16.msra.mxu0 %v752_v2 }
   0xb   :  { %611 = vmatprep.subr.bf16.mxu0 %v715_v1  ;;  %613 = vmatprep.mubr.msk.bf16.mxu0 %vm716_vm0, %v715_v1 }
   0xc   :  { %618 = vmatpush3.bf16.msra.mxu1 %v752_v2  ;;  %621 = vmatprep.mubr.msk.bf16.mxu1 %vm716_vm0, %v715_v1 }
   0xd   :  { %619 = vmatprep.subr.bf16.mxu1 %v715_v1 }
   0xe   :  { %612 = vmatpush3.bf16.msra.mxu0 %v764_v4 }
   0xf   :  { %625 = vmatprep.subr.bf16.mxu0 %v715_v1 }
  0x10   :  { %620 = vmatpush3.bf16.msra.mxu1 %v764_v4 }
  0x11   :  { %633 = vmatprep.subr.bf16.mxu1 %v715_v1 }
  0xc9   :  { %v86_v8 = vpop.f32.mrf.mxu0 }
  0xca   :  { %v791_v9 = vadd.f32 %v552_v7, %v86_v8  ;;  %v141_v10 = vpop.f32.mrf.mxu1 }
  0xcb   :  { %v599_v11 = vpop.f32.mrf.mxu0 }
  0xcc   :  { %v147_v12 = vadd.f32 %v141_v10, %v791_v9  ;;  %v607_v13 = vpop.f32.mrf.mxu1 }
  0xcd   :  { %v89_v14 = vpop.f32.mrf.mxu0 }
  0xce   :  { %673 = vtanh.f32 %v147_v12  ;;  %v144_v15 = vpop.f32.mrf.mxu1 }
  0xcf   :  { %v600_v16 = vpop.f32.mrf.mxu0 }
  0xd0   :  { %v608_v17 = vpop.f32.mrf.mxu1 }
  0xdb   :  { %v674_v18 = vpop.eup %673 }
  0xdc   :  { %v149_v19 = vpack.c.bf16 %v674_v18, %v674_v18  ;;  %v516_v18 = vlaneseq }
  0xde   :  { %614 = vmatmul.mubr.msk.bf16.vlgmr.msra.gmra.mxu0 %vm48_vm1, %v149_v19 }
  0xdf   :  { %626 = vmatpush3.bf16.msra.mxu0 %v752_v2  ;;  %629 = vmatprep.mubr.msk.bf16.mxu0 %vm716_vm0, %v715_v1 }
  0xe0   :  { %627 = vmatprep.subr.bf16.mxu0 %v715_v1 }
  0xe3   :  { %628 = vmatpush3.bf16.msra.mxu0 %v764_v4 }
  0xe4   :  { %641 = vmatprep.subr.bf16.mxu0 %v715_v1 }
 0x19e   :  { %v187_v20 = vpop.f32.mrf.mxu0 }
 0x19f   :  { %v194_v21 = vrot.slane %v187_v20, 7  ;;  %v517_v20 = vshrl.u32 %v516_v18, 7 }
 0x1a0   :  { %v615_v22 = vpop.f32.mrf.mxu0 }
 0x1a1   :  { %v196_v23 = vadd.f32 %v194_v21, %v791_v9  ;;  %v29_v21 = vld [vmem:[%s854_s3 + $0x2] sm:$0x1]  ;;  %v513_v22 = vld [vmem:[%s852_s1] sm:$0x1]  ;;  %s718_s1 = smov [#allocation2]  }
 0x1a2   :  { %v190_v24 = vpop.f32.mrf.mxu0  ;;  %s544_s7 = sshll.u32 %s718_s1, 4  ;;  %s545_s7 = int_to_ptr.vmem [resolvable:$true] %s544_s7 }
 0x1a3   :  { %675 = vtanh.f32 %v196_v23  ;;  %v28_v23 = vld [vmem:[%s854_s3 + $0x1] sm:$0x1]  ;;  %v514_v24 = vmul.f32 %v513_v22, %v29_v21  ;;  %s693_s8 = scalar_lea.vmem %s545_s7, 16  ;;  %s697_s9 = scalar_lea.vmem %s545_s7, 32 }
 0x1a4   :  { %v616_v25 = vpop.f32.mrf.mxu0  ;;  %p694_p0 = scmp.ne.s32.totalorder %s545_s7, %s693_s8  ;;  %p698_p1 = scmp.lt.s32.totalorder %s545_s7, %s545_s7 }
 0x1a5   :  { %v518_v25 = vsub.s32 0, %v517_v20  ;;  %p699_p2 = scmp.lt.s32.totalorder %s697_s9, %s693_s8 }
 0x1a7   :  { %p700_p3 = por %p699_p2, %p698_p1 }
 0x1a9   :  { %p701_p4 = pnand %p700_p3, %p694_p0 }
 0x1b0   :  { %v676_v26 = vpop.eup %675 }
 0x1b1   :  { %v198_v27 = vpack.c.bf16 %v676_v26, %v676_v26  ;;  %v519_v26 = vrot.slane %v514_v24, %v518_v25 }
 0x1b3   :  { %v200_v28 = vshrl.u32 %v198_v27, 16 }
 0x1b5   :  { %622 = vmatmul.mubr.msk.bf16.vlgmr.msra.gmra.mxu1 %vm48_vm1, %v200_v28 }
 0x1b6   :  { %634 = vmatpush3.bf16.msra.mxu1 %v752_v2  ;;  %637 = vmatprep.mubr.msk.bf16.mxu1 %vm716_vm0, %v715_v1 }
 0x1b7   :  { %635 = vmatprep.subr.bf16.mxu1 %v715_v1 }
 0x1ba   :  { %636 = vmatpush3.bf16.msra.mxu1 %v764_v4 }
 0x1bb   :  { %649 = vmatprep.subr.bf16.mxu1 %v715_v1 }
 0x275   :  { %v239_v29 = vpop.f32.mrf.mxu1 }
 0x276   :  { %v246_v30 = vrot.slane %v239_v29, 6 }
 0x277   :  { %v623_v31 = vpop.f32.mrf.mxu1 }
 0x278   :  { %v248_v32 = vadd.f32 %v246_v30, %v791_v9  ;;  %v30_v31 = vld [vmem:[%s854_s3 + $0x3] sm:$0x1] }
 0x279   :  { %v242_v33 = vpop.f32.mrf.mxu1 }
 0x27a   :  { %677 = vtanh.f32 %v248_v32  ;;  %v527_v32 = vrot.slane %v30_v31, 1 }
 0x27b   :  { %v624_v34 = vpop.f32.mrf.mxu1 }
 0x287   :  { %v678_v35 = vpop.eup %677 }
 0x288   :  { %v250_v36 = vpack.c.bf16 %v678_v35, %v678_v35 }
 0x28a   :  { %v252_v37 = vrot.slane %v250_v36, 1 }
 0x28c   :  { %630 = vmatmul.mubr.msk.bf16.vlgmr.msra.gmra.mxu0 %vm48_vm1, %v252_v37 }
 0x28d   :  { %642 = vmatpush3.bf16.msra.mxu0 %v752_v2  ;;  %645 = vmatprep.mubr.msk.bf16.mxu0 %vm716_vm0, %v715_v1 }
 0x28e   :  { %643 = vmatprep.subr.bf16.mxu0 %v715_v1 }
 0x291   :  { %644 = vmatpush3.bf16.msra.mxu0 %v764_v4 }
 0x292   :  { %657 = vmatprep.subr.bf16.mxu0 %v715_v1 }
 0x34c   :  { %v290_v38 = vpop.f32.mrf.mxu0 }
 0x34d   :  { %v297_v39 = vrot.slane %v290_v38, 5 }
 0x34e   :  { %v631_v40 = vpop.f32.mrf.mxu0 }
 0x34f   :  { %v299_v41 = vadd.f32 %v297_v39, %v791_v9 }
 0x350   :  { %v293_v42 = vpop.f32.mrf.mxu0 }
 0x351   :  { %679 = vtanh.f32 %v299_v41 }
 0x352   :  { %v632_v43 = vpop.f32.mrf.mxu0 }
 0x35e   :  { %v680_v44 = vpop.eup %679 }
 0x35f   :  { %v301_v45 = vpack.c.bf16 %v680_v44, %v680_v44 }
 0x361   :  { %v303_v46 = vshrl.u32 %v301_v45, 16 }
 0x363   :  { %v305_v47 = vrot.slane %v303_v46, 1 }
 0x365   :  { %638 = vmatmul.mubr.msk.bf16.vlgmr.msra.gmra.mxu1 %vm48_vm1, %v305_v47 }
 0x366   :  { %650 = vmatpush3.bf16.msra.mxu1 %v752_v2  ;;  %653 = vmatprep.mubr.msk.bf16.mxu1 %vm716_vm0, %v715_v1 }
 0x367   :  { %651 = vmatprep.subr.bf16.mxu1 %v715_v1 }
 0x36a   :  { %652 = vmatpush3.bf16.msra.mxu1 %v764_v4 }
 0x425   :  { %v343_v48 = vpop.f32.mrf.mxu1 }
 0x426   :  { %v350_v49 = vrot.slane %v343_v48, 4 }
 0x427   :  { %v639_v50 = vpop.f32.mrf.mxu1 }
 0x428   :  { %v352_v51 = vadd.f32 %v350_v49, %v791_v9 }
 0x429   :  { %v346_v52 = vpop.f32.mrf.mxu1 }
 0x42a   :  { %681 = vtanh.f32 %v352_v51 }
 0x42b   :  { %v640_v53 = vpop.f32.mrf.mxu1 }
 0x437   :  { %v682_v54 = vpop.eup %681 }
 0x438   :  { %v354_v55 = vpack.c.bf16 %v682_v54, %v682_v54 }
 0x43a   :  { %v356_v56 = vrot.slane %v354_v55, 2 }
 0x43c   :  { %646 = vmatmul.mubr.msk.bf16.vlgmr.msra.gmra.mxu0 %vm48_vm1, %v356_v56 }
 0x43d   :  { %658 = vmatpush3.bf16.msra.mxu0 %v752_v2  ;;  %661 = vmatprep.mubr.msk.bf16.mxu0 %vm716_vm0, %v715_v1 }
 0x43e   :  { %659 = vmatprep.subr.bf16.mxu0 %v715_v1 }
 0x441   :  { %660 = vmatpush3.bf16.msra.mxu0 %v764_v4 }
 0x4fc   :  { %v394_v57 = vpop.f32.mrf.mxu0 }
 0x4fd   :  { %v401_v58 = vrot.slane %v394_v57, 3 }
 0x4fe   :  { %v647_v59 = vpop.f32.mrf.mxu0 }
 0x4ff   :  { %v403_v60 = vadd.f32 %v401_v58, %v791_v9 }
 0x500   :  { %v397_v61 = vpop.f32.mrf.mxu0 }
 0x501   :  { %683 = vtanh.f32 %v403_v60 }
 0x502   :  { %v648_v62 = vpop.f32.mrf.mxu0 }
 0x50e   :  { %v684_v63 = vpop.eup %683 }
 0x50f   :  { %v405_v0 = vpack.c.bf16 %v684_v63, %v684_v63 }
 0x511   :  { %v407_v3 = vshrl.u32 %v405_v0, 16 }
 0x513   :  { %v409_v5 = vrot.slane %v407_v3, 2 }
 0x515   :  { %654 = vmatmul.mubr.msk.bf16.vlgmr.msra.gmra.mxu1 %vm48_vm1, %v409_v5 }
 0x5d5   :  { %v447_v2 = vpop.f32.mrf.mxu1 }
 0x5d6   :  { %v454_v6 = vrot.slane %v447_v2, 2 }
 0x5d7   :  { %v655_v7 = vpop.f32.mrf.mxu1 }
 0x5d8   :  { %v456_v1 = vadd.f32 %v454_v6, %v791_v9 }
 0x5d9   :  { %v450_v4 = vpop.f32.mrf.mxu1 }
 0x5da   :  { %685 = vtanh.f32 %v456_v1 }
 0x5db   :  { %v656_v8 = vpop.f32.mrf.mxu1 }
 0x5e7   :  { %v686_v10 = vpop.eup %685 }
 0x5e8   :  { %v458_v11 = vpack.c.bf16 %v686_v10, %v686_v10 }
 0x5ea   :  { %v460_v12 = vrot.slane %v458_v11, 3 }
 0x5ec   :  { %662 = vmatmul.mubr.msk.bf16.vlgmr.msra.gmra.mxu0 %vm48_vm1, %v460_v12 }
 0x6ac   :  { %v498_v13 = vpop.f32.mrf.mxu0 }
 0x6ad   :  { %v505_v14 = vrot.slane %v498_v13, 1 }
 0x6ae   :  { %v663_v15 = vpop.f32.mrf.mxu0 }
 0x6af   :  { %v507_v16 = vadd.f32 %v505_v14, %v791_v9  ;;  %v510_v9 = vrot.slane %v28_v23, 1 }
 0x6b0   :  { %v501_v17 = vpop.f32.mrf.mxu0 }
 0x6b1   :  { %687 = vtanh.f32 %v507_v16 }
 0x6b2   :  { %v664_v19 = vpop.f32.mrf.mxu0 }
 0x6be   :  { %v688_v27 = vpop.eup %687 }
 0x6bf   :  { %v512_v28 = vmul.f32 %v688_v27, %v510_v9 }
 0x6c1   :  { %v521_v29 = vadd.f32 %v519_v26, %v512_v28 }
 0x6c3   :  { %v523_v30 = vsel %vm522_vm2, %v521_v29, 0.0 }
 0x6c4   :  { %524 = vadd.xlane.f32.xlu0 %v523_v30 }
 0x74d   :  { %v525_v33 = vpop.xlane.xlu0 %524 }
 0x74e   :  { %v529_v34 = vadd.f32 %v527_v32, %v525_v33 }
 0x750   :  { %v565_v35 = vmul.f32 -1.442695, %v529_v34 }
 0x752   :  { %689 = vpow2.f32 %v565_v35 }
 0x75f   :  { %v690_v36 = vpop.eup %689 }
 0x760   :  { %v533_v37 = vadd.f32 1.0, %v690_v36 }
 0x762   :  { %691 = vrcp.f32 %v533_v37 }
 0x76f   :  { %v692_v38 = vpop.eup %691 }
 0x770   :  { %537 = vst.msk [vmem:[#allocation2 - $0x7] sm:$0x80] %vm536_vm3, %v692_v38 }
 0x771   :  { %704 = shalt.err (!%p701_p4)
}
 0x772   :  { %547 = dma.vmem_to_hbm [thread:$0]  %s545_s7, 16, %s855_s4, [#allocation3]  }
 0x773   :  { %713 = dma.done.wait [#allocation3], 16  }
 0x774   :  { %714 = vsyncadd [#allocation3], 4294967280 }
 0x775   :  { %551 = vsyncpa [#allocation3], 1 }

</bundles_post_ra>
